<compile_context>
chip_gen: v7x
topology: tpu7x:2x2x1
jax: 0.10.0
libtpu: 0.0.40
codegen_flags: <defaults>
</compile_context>

<pallas_src>
import functools
import math

import jax
import jax.numpy as jnp
from jax import lax
from jax.experimental import pallas as pl
from jax.experimental.pallas import tpu as pltpu

LANES = 128
SUB_ROWS = 64                  # strip-mine chunk: (64,128) f32 = 8 vregs per intermediate
MAX_TILE_ROWS = 2048           # 2048*128*4 B = 1 MiB per f32 input tile
NUM_SPLITS = 2                 # leading "parallel" grid axis (v7x 2-TC / megacore)
_PAD_X = -1e9                  # -> sigmoid = 0, bce = 0, exp(p) = 1
_PAD_T = -1.0                  # -> tgt = 0
_VMEM_LIMIT = 40 * 1024 * 1024


def _round_up(a, b):
    return (a + b - 1) // b * b


def _mask_iota():
    # local linear element index within a (SUB_ROWS, LANES) chunk
    return (lax.broadcasted_iota(jnp.int32, (SUB_ROWS, LANES), 0) * LANES
            + lax.broadcasted_iota(jnp.int32, (SUB_ROWS, LANES), 1))


def _stable_sigmoid(x):
    """sigmoid(x) plus the 1 + exp(-|x|) piece shared with the BCE softplus term."""
    e = jnp.exp(-jnp.abs(x))                        # EUP
    denom = 1.0 + e
    r = pl.reciprocal(denom, approx=True)           # EUP approx
    r = r * (2.0 - denom * r)                       # one Newton step -> ~f32 accurate
    p = jnp.where(x >= 0, r, e * r)
    return p, denom


def _sums_kernel(x_ref, t_ref, o_ref, *accs,
                 n, tile_rows, tiles_per_split, n_pow, needs_mask):
    """Single streaming pass: sum(p), sum(tgt), sum(p*tgt), sum(bce), M_k = sum(exp(p)^k)."""
    nq = len(accs)
    c = pl.program_id(0)                  # split (TensorCore) index
    i = pl.program_id(1)                  # tile index within this split

    @pl.when(i == 0)
    def _init():
        for a in accs:
            a[...] = jnp.zeros_like(a)

    tile = c * tiles_per_split + i                    # intended global tile index
    tile_base = tile * (tile_rows * LANES)            # first global element of this tile
    lin = _mask_iota() if needs_mask else None

    def chunk(j, carry):
        r0 = pl.multiple_of(j * SUB_ROWS, SUB_ROWS)
        x = x_ref[pl.ds(r0, SUB_ROWS), :].astype(jnp.float32)
        t = t_ref[pl.ds(r0, SUB_ROWS), :].astype(jnp.float32)
        if needs_mask:
            m = lin < (n - (tile_base + j * (SUB_ROWS * LANES)))
            x = jnp.where(m, x, _PAD_X)
            t = jnp.where(m, t, _PAD_T)
        p, denom = _stable_sigmoid(x)
        tgt = (t > 0).astype(jnp.float32)             # == round(sigmoid(t))
        # BCE from logits: max(x,0) - x*tgt + log(1 + exp(-|x|))  (stable, reuses exp)
        bce = jnp.maximum(x, 0.0) - x * tgt + jnp.log(denom)
        quants = [p, tgt, p * tgt, bce]
        if n_pow:
            ep = jnp.exp(p)                           # softmax numerator (p in [0,1])
            epk = ep
            for k in range(n_pow):
                quants.append(epk)
                if k + 1 < n_pow:
                    epk = epk * ep
        # Sublane-axis reductions stay on the VPU; carry is NQ small (1,128) partials.
        # TODO(synk): if a bundle dump shows VALU as the binding slot, offload these
        # reductions to the idle MXU via a ones-vector dot.
        return tuple(cy + jnp.sum(q, axis=0, keepdims=True)
                     for cy, q in zip(carry, quants))

    zero = jnp.zeros((1, LANES), jnp.float32)
    parts = lax.fori_loop(0, tile_rows // SUB_ROWS, chunk, (zero,) * nq, unroll=True)
    for a, s in zip(accs, parts):
        a[...] += s

    @pl.when(i == tiles_per_split - 1)
    def _finalize():
        # Cross-lane reduce + SMEM store once per split, at the very end.
        for k, a in enumerate(accs):
            o_ref[0, k] = jnp.sum(a[...])


def _focal_pow_kernel(inv_s_ref, x_ref, o_ref, acc_ref,
                      *, n, tile_rows, tiles_per_split, gamma, eps, needs_mask):
    """Fallback second pass (non-integer gamma or n beyond the clip-free range):
    accumulates sum((1 - clip(exp(p)/S, eps, 1-eps))**gamma).  Re-reads only x."""
    c = pl.program_id(0)
    i = pl.program_id(1)

    @pl.when(i == 0)
    def _init():
        acc_ref[...] = jnp.zeros_like(acc_ref)

    inv_s = inv_s_ref[...]                            # (1,128) row, broadcasts over rows
    tile = c * tiles_per_split + i
    tile_base = tile * (tile_rows * LANES)
    lin = _mask_iota() if needs_mask else None
    gamma_int = int(gamma) if (float(gamma).is_integer() and 0 <= gamma <= 8) else None

    def chunk(j, carry):
        r0 = pl.multiple_of(j * SUB_ROWS, SUB_ROWS)
        x = x_ref[pl.ds(r0, SUB_ROWS), :].astype(jnp.float32)
        if needs_mask:
            m = lin < (n - (tile_base + j * (SUB_ROWS * LANES)))
            x = jnp.where(m, x, _PAD_X)
        p, _ = _stable_sigmoid(x)
        logit = jnp.clip(jnp.exp(p) * inv_s, eps, 1.0 - eps)
        om = 1.0 - logit                              # >= eps > 0
        if gamma_int is not None:                     # multiply/squaring chain, no EUP
            pw = jnp.ones_like(om)
            base, g = om, gamma_int
            while g:
                if g & 1:
                    pw = pw * base
                g >>= 1
                if g:
                    base = base * base
        else:
            pw = jnp.exp(jnp.float32(gamma) * jnp.log(om))
        return carry + jnp.sum(pw, axis=0, keepdims=True)

    part = lax.fori_loop(0, tile_rows // SUB_ROWS, chunk,
                         jnp.zeros((1, LANES), jnp.float32), unroll=True)
    acc_ref[...] += part

    @pl.when(i == tiles_per_split - 1)
    def _finalize():
        o_ref[0, 0] = jnp.sum(acc_ref[...])


def dice_focal_loss_2(inp, target, gamma=2.0, eps=1e-7):
    """Forward pass of DiceFocalLoss_2."""
    gamma = float(gamma)
    eps = float(eps)

    x = jnp.ravel(inp)            # keep native dtype; ravel/reshape of contiguous is free
    t = jnp.ravel(target)
    n = int(x.shape[0])
    if n == 0:
        raise ValueError("empty input")

    gamma_int = int(gamma) if (gamma.is_integer() and 0 <= gamma <= 4) else None
    # The lower softmax clip can only fire once n > 1/(e*eps); the upper one only for n == 1.
    single_pass = gamma_int is not None and 1 < n <= int(1.0 / (math.e * eps))
    n_pow = gamma_int if single_pass else 1
    nq = 4 + n_pow                # p, tgt, p*tgt, bce, M_1..M_n_pow

    # ---- lay out the flat element stream as (rows, 128) ----
    if n % LANES == 0:
        rows = n // LANES
        x2, t2 = x.reshape(rows, LANES), t.reshape(rows, LANES)
    else:
        # TODO(synk): this is the one remaining whole-array copy; a tail-only kernel (or
        # 1-D blocks with in-kernel masking) would remove it for n % 128 != 0.
        rows = -(-n // LANES)
        padw = rows * LANES - n
        x2 = jnp.pad(x, (0, padw)).reshape(rows, LANES)
        t2 = jnp.pad(t, (0, padw)).reshape(rows, LANES)

    tile_rows = min(MAX_TILE_ROWS, _round_up(rows, SUB_ROWS))
    n_tiles = -(-rows // tile_rows)
    num_splits = NUM_SPLITS if n_tiles >= NUM_SPLITS else 1
    tiles_per_split = -(-n_tiles // num_splits)
    covered = num_splits * tiles_per_split * tile_rows * LANES   # element slots processed
    needs_mask = covered != n
    pad_cnt = covered - n         # masked slots; each contributes exactly exp(0)^k = 1 to M_k

    if num_splits * tiles_per_split == n_tiles:
        def in_map(c, i):
            return (c * tiles_per_split + i, 0)
    else:
        def in_map(c, i):         # overflow tiles re-read the last block, fully masked
            return (jnp.minimum(c * tiles_per_split + i, n_tiles - 1), 0)

    tile_spec = pl.BlockSpec((tile_rows, LANES), in_map)
    cparams = pltpu.CompilerParams(
        # TODO(synk): swap to pltpu.CORE_PARALLEL / pl.core_map if the v7x compiler does not
        # shard the leading split axis across its 2 TensorCores.
        dimension_semantics=("parallel", "arbitrary"),
        vmem_limit_bytes=_VMEM_LIMIT)

    sums = pl.pallas_call(
        functools.partial(_sums_kernel, n=n, tile_rows=tile_rows,
                          tiles_per_split=tiles_per_split, n_pow=n_pow,
                          needs_mask=needs_mask),
        out_shape=jax.ShapeDtypeStruct((num_splits, nq), jnp.float32),
        grid_spec=pltpu.PrefetchScalarGridSpec(
            num_scalar_prefetch=0,
            grid=(num_splits, tiles_per_split),
            in_specs=[tile_spec, tile_spec],
            out_specs=pl.BlockSpec((1, nq), lambda c, i: (c, 0),
                                   memory_space=pltpu.SMEM),
            scratch_shapes=[pltpu.VMEM((1, LANES), jnp.float32)] * nq),
        compiler_params=cparams,
    )(x2, t2)
    sums = jnp.sum(sums, axis=0)          # combine the per-split partial rows

    sum_p, sum_t, sum_pt, bce_sum = sums[0], sums[1], sums[2], sums[3]
    n_f = jnp.float32(n)
    dice_loss = 1.0 - (2.0 * sum_pt + 1.0) / (sum_p + sum_t + 1.0)
    bce_mean = bce_sum / n_f

    if single_pass:
        # Moments M_k = sum_i exp(p_i)^k (masked slots contributed exactly 1 each).
        m = [sums[4 + k] - pad_cnt for k in range(n_pow)]
        focal_pow_sum = n_f
        if gamma_int >= 1:
            s = m[0]                                           # softmax denominator S
            for k in range(1, gamma_int + 1):
                coef = ((-1.0) ** k) * float(math.comb(gamma_int, k))
                focal_pow_sum = focal_pow_sum + coef * (m[k - 1] / (s ** k))
    else:
        s = sums[4] - pad_cnt
        inv_s = (1.0 / s).astype(jnp.float32)
        # Tiny (1,128) VMEM row (512 B double-buffered stream ~ free); broadcasts in-kernel.
        inv_s_row = jnp.broadcast_to(inv_s, (1, LANES))
        raw = pl.pallas_call(
            functools.partial(_focal_pow_kernel, n=n, tile_rows=tile_rows,
                              tiles_per_split=tiles_per_split, gamma=gamma, eps=eps,
                              needs_mask=needs_mask),
            out_shape=jax.ShapeDtypeStruct((num_splits, 1), jnp.float32),
            grid_spec=pltpu.PrefetchScalarGridSpec(
                num_scalar_prefetch=0,
                grid=(num_splits, tiles_per_split),
                in_specs=[pl.BlockSpec((1, LANES), lambda c, i: (0, 0)), tile_spec],
                out_specs=pl.BlockSpec((1, 1), lambda c, i: (c, 0),
                                       memory_space=pltpu.SMEM),
                scratch_shapes=[pltpu.VMEM((1, LANES), jnp.float32)]),
            compiler_params=cparams,
        )(inv_s_row, x2)
        # Remove the known masked-slot contributions (p_pad = 0 -> exp(p) = 1).
        pad_term = (1.0 - jnp.clip(inv_s, eps, 1.0 - eps)) ** gamma
        focal_pow_sum = jnp.sum(raw) - pad_cnt * pad_term

    return bce_mean * (focal_pow_sum / n_f) + dice_loss


def _reference(inp, target, gamma=2.0, eps=1e-7):
    """Plain-JAX replication of the PyTorch module's math."""
    p = jax.nn.sigmoid(jnp.ravel(inp).astype(jnp.float32))
    tgt = jnp.round(jax.nn.sigmoid(jnp.ravel(target).astype(jnp.float32)))
    inter = jnp.sum(p * tgt)
    dice = 1.0 - (2.0 * inter + 1.0) / (jnp.sum(p) + jnp.sum(tgt) + 1.0)
    logit = jnp.clip(jax.nn.softmax(p), eps, 1.0 - eps)
    bce = jnp.mean(-(tgt * jnp.log(p) + (1.0 - tgt) * jnp.log1p(-p)))
    focal = bce * (1.0 - logit) ** gamma
    return jnp.mean(focal) + dice


if __name__ == "__main__":
    key = jax.random.PRNGKey(0)
    ks = jax.random.split(key, 8)
    loss = jax.jit(dice_focal_loss_2, static_argnames=("gamma", "eps"))

    def check(a, b, msg):
        a = jax.block_until_ready(a)
        b = jax.block_until_ready(b)
        assert jnp.isfinite(a), (msg, a)
        assert jnp.allclose(a, b, rtol=1e-4, atol=1e-5), (msg, a, b)

    # 1) default gamma=2 on NCHW logits (single-pass binomial path, masked single tile)
    x = jax.random.normal(ks[0], (2, 4, 16, 16), dtype=jnp.float32)
    y = jax.random.normal(ks[1], (2, 4, 16, 16), dtype=jnp.float32)
    check(loss(x, y), _reference(x, y), "gamma=2")

    # 2) integer gamma=3: still single pass (extra moment + binomial expansion)
    check(loss(x, y, gamma=3.0), _reference(x, y, gamma=3.0), "gamma=3")

    # 3) non-integer gamma: two-pass fallback (focal-power kernel)
    check(loss(x, y, gamma=2.5), _reference(x, y, gamma=2.5), "gamma=2.5")

    # 4) ragged element count (n % 128 != 0): tail pad + in-kernel masking
    xr = jax.random.normal(ks[2], (2, 3, 13, 17), dtype=jnp.float32)
    yr = jax.random.normal(ks[3], (2, 3, 13, 17), dtype=jnp.float32)
    check(loss(xr, yr), _reference(xr, yr), "ragged")

    # 5) bf16 multi-tile with odd tile count: 2-way split + clamped index map + masking
    xb = jax.random.normal(ks[4], (4, 8, 160, 128), dtype=jnp.bfloat16)
    yb = jax.random.normal(ks[5], (4, 8, 160, 128), dtype=jnp.bfloat16)
    check(loss(xb, yb), _reference(xb, yb), "bf16 multi-tile")

    # 6) f32 multi-tile, exact coverage: 2-way split, no masking, no clamping
    xf = jax.random.normal(ks[6], (4, 8, 128, 128), dtype=jnp.float32)
    yf = jax.random.normal(ks[7], (4, 8, 128, 128), dtype=jnp.float32)
    check(loss(xf, yf), _reference(xf, yf), "f32 multi-tile")

    print("KERNEL_OK")
</pallas_src>

<mosaic_0001>
module attributes {stable_mosaic.version = 11 : i64} {
  func.func @_sums_kernel(%arg0: i32, %arg1: i32, %arg2: memref<64x128xf32, #tpu.memory_space<vmem>>, %arg3: memref<64x128xf32, #tpu.memory_space<vmem>>, %arg4: memref<1x6xf32, #tpu.memory_space<smem>>, %arg5: memref<1x128xf32, #tpu.memory_space<vmem>>, %arg6: memref<1x128xf32, #tpu.memory_space<vmem>>, %arg7: memref<1x128xf32, #tpu.memory_space<vmem>>, %arg8: memref<1x128xf32, #tpu.memory_space<vmem>>, %arg9: memref<1x128xf32, #tpu.memory_space<vmem>>, %arg10: memref<1x128xf32, #tpu.memory_space<vmem>>) attributes {dimension_semantics = [#tpu.dimension_semantics<parallel>, #tpu.dimension_semantics<arbitrary>], iteration_bounds = array<i64: 1, 1>, scalar_prefetch = 0 : i64, scratch_operands = 6 : i64, tpu.core_type = #tpu.core_type<tc>, window_params = [{transform_indices = @transform_0, window_bounds = array<i64: 64, 128>}, {transform_indices = @transform_1, window_bounds = array<i64: 64, 128>}, {transform_indices = @transform_2, window_bounds = array<i64: 1, 6>}]} {
    %c0_i32 = arith.constant 0 : i32
    %0 = arith.cmpi eq, %arg1, %c0_i32 : i32
    %1 = arith.extui %0 : i1 to i32
    %c0_i32_0 = arith.constant 0 : i32
    %2 = arith.cmpi ne, %1, %c0_i32_0 : i32
    scf.if %2 {
      %cst_45 = arith.constant 0.000000e+00 : f32
      %94 = vector.broadcast %cst_45 : f32 to vector<1x128xf32>
      %c0_46 = arith.constant 0 : index
      %c0_47 = arith.constant 0 : index
      %95 = vector.load %arg5[%c0_46, %c0_47] : memref<1x128xf32, #tpu.memory_space<vmem>>, vector<1x128xf32>
      tpu.vector_store %arg5[%c0_46, %c0_47], %94 {strides = array<i32>} : memref<1x128xf32, #tpu.memory_space<vmem>>, vector<1x128xf32>,
      %cst_48 = arith.constant 0.000000e+00 : f32
      %96 = vector.broadcast %cst_48 : f32 to vector<1x128xf32>
      %c0_49 = arith.constant 0 : index
      %c0_50 = arith.constant 0 : index
      %97 = vector.load %arg6[%c0_49, %c0_50] : memref<1x128xf32, #tpu.memory_space<vmem>>, vector<1x128xf32>
      tpu.vector_store %arg6[%c0_49, %c0_50], %96 {strides = array<i32>} : memref<1x128xf32, #tpu.memory_space<vmem>>, vector<1x128xf32>,
      %cst_51 = arith.constant 0.000000e+00 : f32
      %98 = vector.broadcast %cst_51 : f32 to vector<1x128xf32>
      %c0_52 = arith.constant 0 : index
      %c0_53 = arith.constant 0 : index
      %99 = vector.load %arg7[%c0_52, %c0_53] : memref<1x128xf32, #tpu.memory_space<vmem>>, vector<1x128xf32>
      tpu.vector_store %arg7[%c0_52, %c0_53], %98 {strides = array<i32>} : memref<1x128xf32, #tpu.memory_space<vmem>>, vector<1x128xf32>,
      %cst_54 = arith.constant 0.000000e+00 : f32
      %100 = vector.broadcast %cst_54 : f32 to vector<1x128xf32>
      %c0_55 = arith.constant 0 : index
      %c0_56 = arith.constant 0 : index
      %101 = vector.load %arg8[%c0_55, %c0_56] : memref<1x128xf32, #tpu.memory_space<vmem>>, vector<1x128xf32>
      tpu.vector_store %arg8[%c0_55, %c0_56], %100 {strides = array<i32>} : memref<1x128xf32, #tpu.memory_space<vmem>>, vector<1x128xf32>,
      %cst_57 = arith.constant 0.000000e+00 : f32
      %102 = vector.broadcast %cst_57 : f32 to vector<1x128xf32>
      %c0_58 = arith.constant 0 : index
      %c0_59 = arith.constant 0 : index
      %103 = vector.load %arg9[%c0_58, %c0_59] : memref<1x128xf32, #tpu.memory_space<vmem>>, vector<1x128xf32>
      tpu.vector_store %arg9[%c0_58, %c0_59], %102 {strides = array<i32>} : memref<1x128xf32, #tpu.memory_space<vmem>>, vector<1x128xf32>,
      %cst_60 = arith.constant 0.000000e+00 : f32
      %104 = vector.broadcast %cst_60 : f32 to vector<1x128xf32>
      %c0_61 = arith.constant 0 : index
      %c0_62 = arith.constant 0 : index
      %105 = vector.load %arg10[%c0_61, %c0_62] : memref<1x128xf32, #tpu.memory_space<vmem>>, vector<1x128xf32>
      tpu.vector_store %arg10[%c0_61, %c0_62], %104 {strides = array<i32>} : memref<1x128xf32, #tpu.memory_space<vmem>>, vector<1x128xf32>,
    } else {
    }
    %c1_i32 = arith.constant 1 : i32
    %3 = arith.muli %arg0, %c1_i32 : i32
    %4 = arith.addi %3, %arg1 : i32
    %c8192_i32 = arith.constant 8192 : i32
    %5 = arith.muli %4, %c8192_i32 : i32
    %6 = tpu.iota {dimensions = array<i32: 0>} : vector<64x128xi32>
    %c128_i32 = arith.constant 128 : i32
    %7 = vector.broadcast %c128_i32 : i32 to vector<64x128xi32>
    %8 = arith.muli %6, %7 : vector<64x128xi32>
    %9 = tpu.iota {dimensions = array<i32: 1>} : vector<64x128xi32>
    %10 = arith.addi %8, %9 : vector<64x128xi32>
    %cst = arith.constant 0.000000e+00 : f32
    %11 = vector.broadcast %cst : f32 to vector<1x128xf32>
    %c0_i32_1 = arith.constant 0 : i32
    %c64_i32 = arith.constant 64 : i32
    %12 = arith.muli %c0_i32_1, %c64_i32 : i32
    %13 = tpu.assume_multiple %12, 64 : i32
    %14 = arith.index_cast %13 : i32 to index
    %c0 = arith.constant 0 : index
    %15 = vector.load %arg2[%14, %c0] : memref<64x128xf32, #tpu.memory_space<vmem>>, vector<64x128xf32>
    %16 = arith.index_cast %13 : i32 to index
    %c0_2 = arith.constant 0 : index
    %17 = vector.load %arg3[%16, %c0_2] : memref<64x128xf32, #tpu.memory_space<vmem>>, vector<64x128xf32>
    %c8192_i32_3 = arith.constant 8192 : i32
    %18 = arith.muli %c0_i32_1, %c8192_i32_3 : i32
    %19 = arith.addi %5, %18 : i32
    %c2048_i32 = arith.constant 2048 : i32
    %20 = arith.subi %c2048_i32, %19 : i32
    %21 = vector.broadcast %20 : i32 to vector<64x128xi32>
    %22 = arith.cmpi slt, %10, %21 : vector<64x128xi32>
    %cst_4 = arith.constant -1.000000e+09 : f32
    %23 = vector.broadcast %cst_4 : f32 to vector<64x128xf32>
    %24 = arith.select %22, %15, %23 : vector<64x128xi1>, vector<64x128xf32>
    %cst_5 = arith.constant -1.000000e+00 : f32
    %25 = vector.broadcast %cst_5 : f32 to vector<64x128xf32>
    %26 = arith.select %22, %17, %25 : vector<64x128xi1>, vector<64x128xf32>
    %27 = math.absf %24 : vector<64x128xf32>
    %cst_6 = arith.constant 0.000000e+00 : f32
    %28 = vector.broadcast %cst_6 : f32 to vector<64x128xf32>
    %29 = arith.subf %28, %27 : vector<64x128xf32>
    %30 = math.exp %29 : vector<64x128xf32>
    %cst_7 = arith.constant 1.000000e+00 : f32
    %31 = vector.broadcast %cst_7 : f32 to vector<64x128xf32>
    %32 = arith.addf %31, %30 : vector<64x128xf32>
    %33 = tpu.reciprocal %32 {approx = true} : vector<64x128xf32> -> vector<64x128xf32>
    %34 = arith.mulf %32, %33 : vector<64x128xf32>
    %cst_8 = arith.constant 2.000000e+00 : f32
    %35 = vector.broadcast %cst_8 : f32 to vector<64x128xf32>
    %36 = arith.subf %35, %34 : vector<64x128xf32>
    %37 = arith.mulf %33, %36 : vector<64x128xf32>
    %cst_9 = arith.constant 0.000000e+00 : f32
    %38 = vector.broadcast %cst_9 : f32 to vector<64x128xf32>
    %39 = arith.cmpf oge, %24, %38 : vector<64x128xf32>
    %40 = arith.mulf %30, %37 : vector<64x128xf32>
    %41 = arith.select %39, %37, %40 : vector<64x128xi1>, vector<64x128xf32>
    %cst_10 = arith.constant 0.000000e+00 : f32
    %42 = vector.broadcast %cst_10 : f32 to vector<64x128xf32>
    %43 = arith.cmpf ogt, %26, %42 : vector<64x128xf32>
    %44 = arith.extui %43 : vector<64x128xi1> to vector<64x128xi32>
    %45 = arith.sitofp %44 : vector<64x128xi32> to vector<64x128xf32>
    %cst_11 = arith.constant 0.000000e+00 : f32
    %46 = vector.broadcast %cst_11 : f32 to vector<64x128xf32>
    %47 = arith.maximumf %24, %46 : vector<64x128xf32>
    %48 = arith.mulf %24, %45 : vector<64x128xf32>
    %49 = arith.subf %47, %48 : vector<64x128xf32>
    %50 = math.log %32 : vector<64x128xf32>
    %51 = arith.addf %49, %50 : vector<64x128xf32>
    %52 = arith.mulf %41, %45 : vector<64x128xf32>
    %53 = math.exp %41 : vector<64x128xf32>
    %54 = arith.mulf %53, %53 : vector<64x128xf32>
    %cst_12 = arith.constant dense<0.000000e+00> : vector<128xf32>
    %55 = vector.multi_reduction <add>, %41, %cst_12 [0] : vector<64x128xf32> to vector<128xf32>
    %56 = vector.shape_cast %55 : vector<128xf32> to vector<1x128xf32>
    %57 = arith.addf %11, %56 : vector<1x128xf32>
    %cst_13 = arith.constant dense<0.000000e+00> : vector<128xf32>
    %58 = vector.multi_reduction <add>, %45, %cst_13 [0] : vector<64x128xf32> to vector<128xf32>
    %59 = vector.shape_cast %58 : vector<128xf32> to vector<1x128xf32>
    %60 = arith.addf %11, %59 : vector<1x128xf32>
    %cst_14 = arith.constant dense<0.000000e+00> : vector<128xf32>
    %61 = vector.multi_reduction <add>, %52, %cst_14 [0] : vector<64x128xf32> to vector<128xf32>
    %62 = vector.shape_cast %61 : vector<128xf32> to vector<1x128xf32>
    %63 = arith.addf %11, %62 : vector<1x128xf32>
    %cst_15 = arith.constant dense<0.000000e+00> : vector<128xf32>
    %64 = vector.multi_reduction <add>, %51, %cst_15 [0] : vector<64x128xf32> to vector<128xf32>
    %65 = vector.shape_cast %64 : vector<128xf32> to vector<1x128xf32>
    %66 = arith.addf %11, %65 : vector<1x128xf32>
    %cst_16 = arith.constant dense<0.000000e+00> : vector<128xf32>
    %67 = vector.multi_reduction <add>, %53, %cst_16 [0] : vector<64x128xf32> to vector<128xf32>
    %68 = vector.shape_cast %67 : vector<128xf32> to vector<1x128xf32>
    %69 = arith.addf %11, %68 : vector<1x128xf32>
    %cst_17 = arith.constant dense<0.000000e+00> : vector<128xf32>
    %70 = vector.multi_reduction <add>, %54, %cst_17 [0] : vector<64x128xf32> to vector<128xf32>
    %71 = vector.shape_cast %70 : vector<128xf32> to vector<1x128xf32>
    %72 = arith.addf %11, %71 : vector<1x128xf32>
    %c1_i32_18 = arith.constant 1 : i32
    %c0_19 = arith.constant 0 : index
    %c0_20 = arith.constant 0 : index
    %73 = vector.load %arg5[%c0_19, %c0_20] : memref<1x128xf32, #tpu.memory_space<vmem>>, vector<1x128xf32>
    %74 = arith.addf %73, %57 : vector<1x128xf32>
    %c0_21 = arith.constant 0 : index
    %c0_22 = arith.constant 0 : index
    %75 = vector.load %arg5[%c0_21, %c0_22] : memref<1x128xf32, #tpu.memory_space<vmem>>, vector<1x128xf32>
    tpu.vector_store %arg5[%c0_21, %c0_22], %74 {strides = array<i32>} : memref<1x128xf32, #tpu.memory_space<vmem>>, vector<1x128xf32>,
    %c0_23 = arith.constant 0 : index
    %c0_24 = arith.constant 0 : index
    %76 = vector.load %arg6[%c0_23, %c0_24] : memref<1x128xf32, #tpu.memory_space<vmem>>, vector<1x128xf32>
    %77 = arith.addf %76, %60 : vector<1x128xf32>
    %c0_25 = arith.constant 0 : index
    %c0_26 = arith.constant 0 : index
    %78 = vector.load %arg6[%c0_25, %c0_26] : memref<1x128xf32, #tpu.memory_space<vmem>>, vector<1x128xf32>
    tpu.vector_store %arg6[%c0_25, %c0_26], %77 {strides = array<i32>} : memref<1x128xf32, #tpu.memory_space<vmem>>, vector<1x128xf32>,
    %c0_27 = arith.constant 0 : index
    %c0_28 = arith.constant 0 : index
    %79 = vector.load %arg7[%c0_27, %c0_28] : memref<1x128xf32, #tpu.memory_space<vmem>>, vector<1x128xf32>
    %80 = arith.addf %79, %63 : vector<1x128xf32>
    %c0_29 = arith.constant 0 : index
    %c0_30 = arith.constant 0 : index
    %81 = vector.load %arg7[%c0_29, %c0_30] : memref<1x128xf32, #tpu.memory_space<vmem>>, vector<1x128xf32>
    tpu.vector_store %arg7[%c0_29, %c0_30], %80 {strides = array<i32>} : memref<1x128xf32, #tpu.memory_space<vmem>>, vector<1x128xf32>,
    %c0_31 = arith.constant 0 : index
    %c0_32 = arith.constant 0 : index
    %82 = vector.load %arg8[%c0_31, %c0_32] : memref<1x128xf32, #tpu.memory_space<vmem>>, vector<1x128xf32>
    %83 = arith.addf %82, %66 : vector<1x128xf32>
    %c0_33 = arith.constant 0 : index
    %c0_34 = arith.constant 0 : index
    %84 = vector.load %arg8[%c0_33, %c0_34] : memref<1x128xf32, #tpu.memory_space<vmem>>, vector<1x128xf32>
    tpu.vector_store %arg8[%c0_33, %c0_34], %83 {strides = array<i32>} : memref<1x128xf32, #tpu.memory_space<vmem>>, vector<1x128xf32>,
    %c0_35 = arith.constant 0 : index
    %c0_36 = arith.constant 0 : index
    %85 = vector.load %arg9[%c0_35, %c0_36] : memref<1x128xf32, #tpu.memory_space<vmem>>, vector<1x128xf32>
    %86 = arith.addf %85, %69 : vector<1x128xf32>
    %c0_37 = arith.constant 0 : index
    %c0_38 = arith.constant 0 : index
    %87 = vector.load %arg9[%c0_37, %c0_38] : memref<1x128xf32, #tpu.memory_space<vmem>>, vector<1x128xf32>
    tpu.vector_store %arg9[%c0_37, %c0_38], %86 {strides = array<i32>} : memref<1x128xf32, #tpu.memory_space<vmem>>, vector<1x128xf32>,
    %c0_39 = arith.constant 0 : index
    %c0_40 = arith.constant 0 : index
    %88 = vector.load %arg10[%c0_39, %c0_40] : memref<1x128xf32, #tpu.memory_space<vmem>>, vector<1x128xf32>
    %89 = arith.addf %88, %72 : vector<1x128xf32>
    %c0_41 = arith.constant 0 : index
    %c0_42 = arith.constant 0 : index
    %90 = vector.load %arg10[%c0_41, %c0_42] : memref<1x128xf32, #tpu.memory_space<vmem>>, vector<1x128xf32>
    tpu.vector_store %arg10[%c0_41, %c0_42], %89 {strides = array<i32>} : memref<1x128xf32, #tpu.memory_space<vmem>>, vector<1x128xf32>,
    %c0_i32_43 = arith.constant 0 : i32
    %91 = arith.cmpi eq, %arg1, %c0_i32_43 : i32
    %92 = arith.extui %91 : i1 to i32
    %c0_i32_44 = arith.constant 0 : i32
    %93 = arith.cmpi ne, %92, %c0_i32_44 : i32
    scf.if %93 {
      %c0_45 = arith.constant 0 : index
      %c0_46 = arith.constant 0 : index
      %94 = vector.load %arg5[%c0_45, %c0_46] : memref<1x128xf32, #tpu.memory_space<vmem>>, vector<1x128xf32>
      %95 = vector.shape_cast %94 : vector<1x128xf32> to vector<1x1x128xf32>
      %cst_47 = arith.constant dense<0.000000e+00> : vector<1xf32>
      %96 = vector.multi_reduction <add>, %95, %cst_47 [1, 2] : vector<1x1x128xf32> to vector<1xf32>
      %97 = vector.shape_cast %96 : vector<1xf32> to vector<1x1x1xf32>
      %98 = vector.extract %97[0, 0, 0] : f32 from vector<1x1x1xf32>
      %c0_48 = arith.constant 0 : index
      %c0_49 = arith.constant 0 : index
      %99 = memref.load %arg4[%c0_48, %c0_49] : memref<1x6xf32, #tpu.memory_space<smem>>
      memref.store %98, %arg4[%c0_48, %c0_49] : memref<1x6xf32, #tpu.memory_space<smem>>
      %c0_50 = arith.constant 0 : index
      %c0_51 = arith.constant 0 : index
      %100 = vector.load %arg6[%c0_50, %c0_51] : memref<1x128xf32, #tpu.memory_space<vmem>>, vector<1x128xf32>
      %101 = vector.shape_cast %100 : vector<1x128xf32> to vector<1x1x128xf32>
      %cst_52 = arith.constant dense<0.000000e+00> : vector<1xf32>
      %102 = vector.multi_reduction <add>, %101, %cst_52 [1, 2] : vector<1x1x128xf32> to vector<1xf32>
      %103 = vector.shape_cast %102 : vector<1xf32> to vector<1x1x1xf32>
      %104 = vector.extract %103[0, 0, 0] : f32 from vector<1x1x1xf32>
      %c0_53 = arith.constant 0 : index
      %c1 = arith.constant 1 : index
      %105 = memref.load %arg4[%c0_53, %c1] : memref<1x6xf32, #tpu.memory_space<smem>>
      memref.store %104, %arg4[%c0_53, %c1] : memref<1x6xf32, #tpu.memory_space<smem>>
      %c0_54 = arith.constant 0 : index
      %c0_55 = arith.constant 0 : index
      %106 = vector.load %arg7[%c0_54, %c0_55] : memref<1x128xf32, #tpu.memory_space<vmem>>, vector<1x128xf32>
      %107 = vector.shape_cast %106 : vector<1x128xf32> to vector<1x1x128xf32>
      %cst_56 = arith.constant dense<0.000000e+00> : vector<1xf32>
      %108 = vector.multi_reduction <add>, %107, %cst_56 [1, 2] : vector<1x1x128xf32> to vector<1xf32>
      %109 = vector.shape_cast %108 : vector<1xf32> to vector<1x1x1xf32>
      %110 = vector.extract %109[0, 0, 0] : f32 from vector<1x1x1xf32>
      %c0_57 = arith.constant 0 : index
      %c2 = arith.constant 2 : index
      %111 = memref.load %arg4[%c0_57, %c2] : memref<1x6xf32, #tpu.memory_space<smem>>
      memref.store %110, %arg4[%c0_57, %c2] : memref<1x6xf32, #tpu.memory_space<smem>>
      %c0_58 = arith.constant 0 : index
      %c0_59 = arith.constant 0 : index
      %112 = vector.load %arg8[%c0_58, %c0_59] : memref<1x128xf32, #tpu.memory_space<vmem>>, vector<1x128xf32>
      %113 = vector.shape_cast %112 : vector<1x128xf32> to vector<1x1x128xf32>
      %cst_60 = arith.constant dense<0.000000e+00> : vector<1xf32>
      %114 = vector.multi_reduction <add>, %113, %cst_60 [1, 2] : vector<1x1x128xf32> to vector<1xf32>
      %115 = vector.shape_cast %114 : vector<1xf32> to vector<1x1x1xf32>
      %116 = vector.extract %115[0, 0, 0] : f32 from vector<1x1x1xf32>
      %c0_61 = arith.constant 0 : index
      %c3 = arith.constant 3 : index
      %117 = memref.load %arg4[%c0_61, %c3] : memref<1x6xf32, #tpu.memory_space<smem>>
      memref.store %116, %arg4[%c0_61, %c3] : memref<1x6xf32, #tpu.memory_space<smem>>
      %c0_62 = arith.constant 0 : index
      %c0_63 = arith.constant 0 : index
      %118 = vector.load %arg9[%c0_62, %c0_63] : memref<1x128xf32, #tpu.memory_space<vmem>>, vector<1x128xf32>
      %119 = vector.shape_cast %118 : vector<1x128xf32> to vector<1x1x128xf32>
      %cst_64 = arith.constant dense<0.000000e+00> : vector<1xf32>
      %120 = vector.multi_reduction <add>, %119, %cst_64 [1, 2] : vector<1x1x128xf32> to vector<1xf32>
      %121 = vector.shape_cast %120 : vector<1xf32> to vector<1x1x1xf32>
      %122 = vector.extract %121[0, 0, 0] : f32 from vector<1x1x1xf32>
      %c0_65 = arith.constant 0 : index
      %c4 = arith.constant 4 : index
      %123 = memref.load %arg4[%c0_65, %c4] : memref<1x6xf32, #tpu.memory_space<smem>>
      memref.store %122, %arg4[%c0_65, %c4] : memref<1x6xf32, #tpu.memory_space<smem>>
      %c0_66 = arith.constant 0 : index
      %c0_67 = arith.constant 0 : index
      %124 = vector.load %arg10[%c0_66, %c0_67] : memref<1x128xf32, #tpu.memory_space<vmem>>, vector<1x128xf32>
      %125 = vector.shape_cast %124 : vector<1x128xf32> to vector<1x1x128xf32>
      %cst_68 = arith.constant dense<0.000000e+00> : vector<1xf32>
      %126 = vector.multi_reduction <add>, %125, %cst_68 [1, 2] : vector<1x1x128xf32> to vector<1xf32>
      %127 = vector.shape_cast %126 : vector<1xf32> to vector<1x1x1xf32>
      %128 = vector.extract %127[0, 0, 0] : f32 from vector<1x1x1xf32>
      %c0_69 = arith.constant 0 : index
      %c5 = arith.constant 5 : index
      %129 = memref.load %arg4[%c0_69, %c5] : memref<1x6xf32, #tpu.memory_space<smem>>
      memref.store %128, %arg4[%c0_69, %c5] : memref<1x6xf32, #tpu.memory_space<smem>>
    } else {
    }
    return
  }
  func.func @transform_0(%arg0: i32, %arg1: i32) -> (i32, i32) {
    %c1_i32 = arith.constant 1 : i32
    %0 = arith.muli %arg0, %c1_i32 : i32
    %1 = arith.addi %0, %arg1 : i32
    %c0_i32 = arith.constant 0 : i32
    %c0_i32_0 = arith.constant 0 : i32
    return %1, %c0_i32 : i32, i32
  }
  func.func @transform_1(%arg0: i32, %arg1: i32) -> (i32, i32) {
    %c1_i32 = arith.constant 1 : i32
    %0 = arith.muli %arg0, %c1_i32 : i32
    %1 = arith.addi %0, %arg1 : i32
    %c0_i32 = arith.constant 0 : i32
    %c0_i32_0 = arith.constant 0 : i32
    return %1, %c0_i32 : i32, i32
  }
  func.func @transform_2(%arg0: i32, %arg1: i32) -> (i32, i32) {
    %c0_i32 = arith.constant 0 : i32
    %c0_i32_0 = arith.constant 0 : i32
    return %arg0, %c0_i32 : i32, i32
  }
}

</mosaic_0001>

<bundles_post_ra>
// kernel: dice_focal_loss_2.1
= control target key start
LH: loop header
LB: loop body
LE: loop exit
PB: predicated region body
PF: predicated region fallthrough
CT: control target
= control target key end

     0   :  { %v88_v0 = vlaneseq  ;;  %v668_v1 = vmov 0.0   ;;  %s967_s0 = inlined_call_operand.vmem [shape: f32[16,128], index: 0, kind: input, shape index: {}]   ;;  %s968_s1 = inlined_call_operand.vmem [shape: f32[16,128], index: 1, kind: input, shape index: {}]   ;;  %s969_s2 = inlined_call_operand.vmem [shape: f32[1,6], index: 2, kind: output, shape index: {}]  }
   0x1   :  { %81 = vst [vmem:[#allocation3] sm:$0x1] %v668_v1  ;;  %80 = vst [vmem:[#allocation2] sm:$0x1] %v668_v1 }
   0x2   :  { %82 = vst [vmem:[#allocation4] sm:$0x1] %v668_v1  ;;  %83 = vst [vmem:[#allocation5] sm:$0x1] %v668_v1  ;;  %v89_v2 = vshrl.u32 %v88_v0, 7  ;;  %v106_v3 = vand.u32 127, %v88_v0 }
   0x3   :  { %84 = vst [vmem:[#allocation6] sm:$0x1] %v668_v1  ;;  %85 = vst [vmem:[#allocation7] sm:$0x1] %v668_v1 }
   0x4   :  { %v90_v4 = vadd.s32 8, %v89_v2  ;;  %v91_v5 = vadd.s32 16, %v89_v2  ;;  %v92_v6 = vadd.s32 24, %v89_v2  ;;  %v93_v7 = vadd.s32 32, %v89_v2 }
   0x5   :  { %v94_v8 = vadd.s32 40, %v89_v2  ;;  %v95_v9 = vadd.s32 48, %v89_v2  ;;  %v96_v10 = vadd.s32 56, %v89_v2  ;;  %v97_v11 = vmul.u32 128, %v89_v2 }
   0x6   :  { %v98_v12 = vmul.u32 128, %v90_v4  ;;  %v99_v13 = vmul.u32 128, %v91_v5 }
   0x7   :  { %7 = vsyncpa [#allocation9], 0  ;;  %v100_v14 = vmul.u32 128, %v92_v6  ;;  %v101_v15 = vmul.u32 128, %v93_v7  ;;  %v107_v16 = vadd.s32 %v106_v3, %v97_v11  ;;  %v115_v26 = vld [vmem:[%s967_s0] sm:$0xff]  ;;  %v116_v28 = vld [vmem:[%s967_s0 + $0x8] sm:$0xff] }
   0x8   :  { %v102_v17 = vmul.u32 128, %v94_v8  ;;  %v103_v18 = vmul.u32 128, %v95_v9  ;;  %v108_v19 = vadd.s32 %v106_v3, %v98_v12  ;;  %v691_v20 = vadd.s32 %v106_v3, %v99_v13  ;;  %v117_v29 = vld [vmem:[%s967_s0 + $0x10] sm:$0xff]  ;;  %v118_v30 = vld [vmem:[%s967_s0 + $0x18] sm:$0xff]  ;;  %v119_v31 = vld [vmem:[%s967_s0 + $0x20] sm:$0xff]  ;;  %s547_s17 = sshll.u32 %s969_s2, 4  ;;  %s548_s17 = int_to_ptr.vmem [resolvable:$true] %s547_s17 }
   0x9   :  { %v104_v21 = vmul.u32 128, %v96_v10  ;;  %v693_v22 = vadd.s32 %v106_v3, %v100_v14  ;;  %v695_v23 = vadd.s32 %v106_v3, %v101_v15  ;;  %vm133_vm0 = vcmp.lt.s32.totalorder %v107_v16, 2048  ;;  %v120_v32 = vld [vmem:[%s967_s0 + $0x28] sm:$0xff]  ;;  %v121_v33 = vld [vmem:[%s967_s0 + $0x30] sm:$0xff]  ;;  %v122_v34 = vld [vmem:[%s967_s0 + $0x38] sm:$0xff]  ;;  %s654_s20 = scalar_lea.vmem %s548_s17, 16  ;;  %p659_p1 = scmp.lt.s32.totalorder %s548_s17, %s548_s17 }
   0xa   :  { %v697_v24 = vadd.s32 %v106_v3, %v102_v17  ;;  %v699_v25 = vadd.s32 %v106_v3, %v103_v18  ;;  %vm134_vm1 = vcmp.lt.s32.totalorder %v108_v19, 2048  ;;  %vm135_vm2 = vcmp.lt.s32.totalorder %v691_v20, 2048  ;;  %v123_v54 = vld [vmem:[%s968_s1] sm:$0xff]  ;;  %v124_v58 = vld [vmem:[%s968_s1 + $0x8] sm:$0xff]  ;;  %v125_v2 = vld [vmem:[%s968_s1 + $0x10] sm:$0xff]  ;;  %p655_p0 = scmp.ne.s32.totalorder %s548_s17, %s654_s20  ;;  %p660_p2 = scmp.lt.s32.totalorder %s654_s20, %s654_s20 }
   0xb   :  { %v704_v27 = vadd.s32 %v106_v3, %v104_v21  ;;  %vm136_vm3 = vcmp.lt.s32.totalorder %v693_v22, 2048  ;;  %vm137_vm4 = vcmp.lt.s32.totalorder %v695_v23, 2048  ;;  %v734_v35 = vsel %vm133_vm0, %v115_v26, -1e+09  ;;  %v126_v7 = vld [vmem:[%s968_s1 + $0x18] sm:$0xff]  ;;  %v127_v8 = vld [vmem:[%s968_s1 + $0x20] sm:$0xff] }
   0xc   :  { %vm138_vm5 = vcmp.lt.s32.totalorder %v697_v24, 2048  ;;  %vm139_vm6 = vcmp.lt.s32.totalorder %v699_v25, 2048  ;;  %v737_v36 = vsel %vm134_vm1, %v116_v28, -1e+09  ;;  %v741_v37 = vsel %vm135_vm2, %v117_v29, -1e+09  ;;  %p661_p3 = por %p660_p2, %p659_p1 }
   0xd   :  { %vm140_vm7 = vcmp.lt.s32.totalorder %v704_v27, 2048  ;;  %v745_v38 = vsel %vm136_vm3, %v118_v30, -1e+09  ;;  %v749_v39 = vsel %vm137_vm4, %v119_v31, -1e+09  ;;  %v149_v4 = vsel %vm133_vm0, %v123_v54, -1.0 }
   0xe   :  { %v753_v40 = vsel %vm138_vm5, %v120_v32, -1e+09  ;;  %v757_v41 = vsel %vm139_vm6, %v121_v33, -1e+09  ;;  %v761_v42 = vsel %vm140_vm7, %v122_v34, -1e+09  ;;  %p662_p4 = pnand %p661_p3, %p655_p0 }
   0xf   :  { %v157_v43 = vand.u32 2147483647, %v734_v35  ;;  %v158_v44 = vand.u32 2147483647, %v737_v36  ;;  %v159_v45 = vand.u32 2147483647, %v741_v37 }
  0x10   :  { %v160_v46 = vand.u32 2147483647, %v745_v38  ;;  %v161_v47 = vand.u32 2147483647, %v749_v39  ;;  %v162_v48 = vand.u32 2147483647, %v753_v40 }
  0x11   :  { %v163_v49 = vand.u32 2147483647, %v757_v41  ;;  %v164_v50 = vand.u32 2147483647, %v761_v42  ;;  %v165_v51 = vsub.f32 0.0, %v157_v43  ;;  %v166_v52 = vsub.f32 0.0, %v158_v44 }
  0x12   :  { %v167_v53 = vsub.f32 0.0, %v159_v45  ;;  %v168_v55 = vsub.f32 0.0, %v160_v46  ;;  %v169_v56 = vsub.f32 0.0, %v161_v47  ;;  %v170_v57 = vsub.f32 0.0, %v162_v48  ;;  %v128_v10 = vld [vmem:[%s968_s1 + $0x28] sm:$0xff]  ;;  %v129_v11 = vld [vmem:[%s968_s1 + $0x30] sm:$0xff] }
  0x13   :  { %v171_v59 = vsub.f32 0.0, %v163_v49  ;;  %v173_v60 = vmul.f32 1.442695, %v165_v51  ;;  %v175_v61 = vmul.f32 1.442695, %v166_v52  ;;  %v172_v62 = vsub.f32 0.0, %v164_v50 }
  0x14   :  { %v177_v63 = vmul.f32 1.442695, %v167_v53  ;;  %v179_v0 = vmul.f32 1.442695, %v168_v55  ;;  %v181_v3 = vmul.f32 1.442695, %v169_v56 }
  0x15   :  { %590 = vpow2.f32 %v173_v60  ;;  %v150_v5 = vsel %vm134_vm1, %v124_v58, -1.0  ;;  %v183_v6 = vmul.f32 1.442695, %v170_v57  ;;  %v185_v9 = vmul.f32 1.442695, %v171_v59  ;;  %v130_v14 = vld [vmem:[%s968_s1 + $0x38] sm:$0xff] }
  0x16   :  { %592 = vpow2.f32 %v175_v61  ;;  %v151_v12 = vsel %vm135_vm2, %v125_v2, -1.0  ;;  %v187_v13 = vmul.f32 1.442695, %v172_v62  ;;  %vm253_vm8 = vcmp.gt.f32.partialorder %v149_v4, 0.0 }
  0x17   :  { %594 = vpow2.f32 %v177_v63  ;;  %vm254_vm9 = vcmp.gt.f32.partialorder %v150_v5, 0.0  ;;  %v152_v15 = vsel %vm136_vm3, %v126_v7, -1.0  ;;  %v153_v16 = vsel %vm137_vm4, %v127_v8, -1.0 }
  0x18   :  { %596 = vpow2.f32 %v179_v0  ;;  %v154_v17 = vsel %vm138_vm5, %v128_v10, -1.0  ;;  %v155_v18 = vsel %vm139_vm6, %v129_v11, -1.0  ;;  %vm255_vm10 = vcmp.gt.f32.partialorder %v151_v12, 0.0 }
  0x19   :  { %598 = vpow2.f32 %v181_v3  ;;  %v156_v19 = vsel %vm140_vm7, %v130_v14, -1.0  ;;  %v810_v20 = vsel %vm253_vm8, 1.0, %v668_v1  ;;  %v813_v21 = vsel %vm254_vm9, 1.0, %v668_v1 }
  0x1a   :  { %600 = vpow2.f32 %v183_v6  ;;  %vm256_vm11 = vcmp.gt.f32.partialorder %v152_v15, 0.0  ;;  %v371_v22 = vadd.f32 %v813_v21, %v810_v20  ;;  %vm257_vm12 = vcmp.gt.f32.partialorder %v153_v16, 0.0 }
  0x1b   :  { %602 = vpow2.f32 %v185_v9  ;;  %vm258_vm13 = vcmp.gt.f32.partialorder %v154_v17, 0.0  ;;  %v818_v23 = vsel %vm255_vm10, 1.0, %v668_v1  ;;  %vm259_vm14 = vcmp.gt.f32.partialorder %v155_v18, 0.0 }
  0x1c   :  { %604 = vpow2.f32 %v187_v13  ;;  %vm260_vm15 = vcmp.gt.f32.partialorder %v156_v19, 0.0  ;;  %v372_v25 = vadd.f32 %v818_v23, %v371_v22  ;;  %v826_v27 = vsel %vm256_vm11, 1.0, %v668_v1 }
  0x1d   :  { %v832_v30 = vsel %vm257_vm12, 1.0, %v668_v1  ;;  %v835_v31 = vsel %vm258_vm13, 1.0, %v668_v1  ;;  %v842_v43 = vsel %vm259_vm14, 1.0, %v668_v1  ;;  %v845_v44 = vsel %vm260_vm15, 1.0, %v668_v1 }
  0x1e   :  { %v373_v32 = vadd.f32 %v826_v27, %v372_v25  ;;  %v285_v47 = vmul.f32 %v810_v20, %v734_v35  ;;  %v286_v51 = vmul.f32 %v813_v21, %v737_v36  ;;  %v287_v1 = vmul.f32 %v818_v23, %v741_v37 }
  0x1f   :  { %v820_v24 = vpop.eup %590  ;;  %v288_v54 = vmul.f32 %v826_v27, %v745_v38  ;;  %v289_v58 = vmul.f32 %v832_v30, %v749_v39  ;;  %v290_v59 = vmul.f32 %v835_v31, %v753_v40  ;;  %v277_v63 = vmax.f32 %v734_v35, 0.0 }
  0x20   :  { %v823_v26 = vpop.eup %592  ;;  %v189_v28 = vadd.f32 1.0, %v820_v24  ;;  %v374_v48 = vadd.f32 %v832_v30, %v373_v32  ;;  %v278_v0 = vmax.f32 %v737_v36, 0.0  ;;  %v279_v2 = vmax.f32 %v741_v37, 0.0 }
  0x21   :  { %v829_v29 = vpop.eup %594  ;;  %v190_v33 = vadd.f32 1.0, %v823_v26  ;;  %v280_v3 = vmax.f32 %v745_v38, 0.0  ;;  %v291_v4 = vmul.f32 %v842_v43, %v757_v41  ;;  %v281_v6 = vmax.f32 %v749_v39, 0.0 }
  0x22   :  { %v839_v34 = vpop.eup %596  ;;  %v191_v45 = vadd.f32 1.0, %v829_v29  ;;  %606 = vrcp.f32 %v189_v28  ;;  %v375_v55 = vadd.f32 %v835_v31, %v374_v48  ;;  %v292_v7 = vmul.f32 %v845_v44, %v761_v42 }
  0x23   :  { %v848_v46 = vpop.eup %598  ;;  %v192_v49 = vadd.f32 1.0, %v839_v34  ;;  %608 = vrcp.f32 %v190_v33  ;;  %v282_v8 = vmax.f32 %v753_v40, 0.0  ;;  %v283_v9 = vmax.f32 %v757_v41, 0.0 }
  0x24   :  { %v854_v50 = vpop.eup %600  ;;  %v193_v52 = vadd.f32 1.0, %v848_v46  ;;  %610 = vrcp.f32 %v191_v45  ;;  %v376_v61 = vadd.f32 %v842_v43, %v375_v55  ;;  %v284_v11 = vmax.f32 %v761_v42, 0.0 }
  0x25   :  { %v861_v53 = vpop.eup %602  ;;  %v194_v56 = vadd.f32 1.0, %v854_v50  ;;  %612 = vrcp.f32 %v192_v49  ;;  %v892_v12 = vsub.f32 %v277_v63, %v285_v47  ;;  %v894_v14 = vsub.f32 %v278_v0, %v286_v51 }
  0x26   :  { %v867_v57 = vpop.eup %604  ;;  %v195_v60 = vadd.f32 1.0, %v861_v53  ;;  %614 = vrcp.f32 %v193_v52  ;;  %v377_v5 = vadd.f32 %v845_v44, %v376_v61  ;;  %v896_v15 = vsub.f32 %v279_v2, %v287_v1 }
  0x27   :  { %v876_v62 = vadd.f32 1.0, %v867_v57  ;;  %616 = vrcp.f32 %v194_v56  ;;  %v898_v16 = vsub.f32 %v280_v3, %v288_v54  ;;  %v900_v19 = vsub.f32 %v281_v6, %v289_v58 }
  0x28   :  { %618 = vrcp.f32 %v195_v60  ;;  %v378_v10 = vrot.slane %v377_v5, 4  ;;  %v902_v32 = vsub.f32 %v282_v8, %v290_v59  ;;  %v904_v47 = vsub.f32 %v283_v9, %v291_v4 }
  0x29   :  { %620 = vrcp.f32 %v876_v62  ;;  %v906_v63 = vsub.f32 %v284_v11, %v292_v7  ;;  %vm229_vm0 = vcmp.ge.f32.partialorder %v734_v35, 0.0  ;;  %vm230_vm1 = vcmp.ge.f32.partialorder %v737_v36, 0.0 }
  0x2a   :  { %622 = vlog2.f32 %v189_v28  ;;  %v379_v18 = vadd.f32 %v378_v10, %v377_v5  ;;  %vm231_vm2 = vcmp.ge.f32.partialorder %v741_v37, 0.0  ;;  %vm232_vm3 = vcmp.ge.f32.partialorder %v745_v38, 0.0  ;;  %v444_v10 = vld [vmem:[#allocation3] sm:$0x1] }
  0x2b   :  { %624 = vlog2.f32 %v190_v33  ;;  %vm233_vm4 = vcmp.ge.f32.partialorder %v749_v39, 0.0  ;;  %vm234_vm5 = vcmp.ge.f32.partialorder %v753_v40, 0.0  ;;  %vm463_vm6 = vcmask 1040384  }
  0x2c   :  { %v607_v13 = vpop.eup %606  ;;  %626 = vlog2.f32 %v191_v45  ;;  %v380_v55 = vrot.slane %v379_v18, 2  ;;  %vm235_vm7 = vcmp.ge.f32.partialorder %v757_v41, 0.0  ;;  %vm236_vm8 = vcmp.ge.f32.partialorder %v761_v42, 0.0 }
  0x2d   :  { %v609_v17 = vpop.eup %608  ;;  %628 = vlog2.f32 %v192_v49  ;;  %v205_v22 = vmul.f32 %v607_v13, %v189_v28 }
  0x2e   :  { %v611_v25 = vpop.eup %610  ;;  %630 = vlog2.f32 %v193_v52  ;;  %v206_v48 = vmul.f32 %v609_v17, %v190_v33  ;;  %v381_v28 = vadd.f32 %v380_v55, %v379_v18 }
  0x2f   :  { %v613_v51 = vpop.eup %612  ;;  %632 = vlog2.f32 %v194_v56  ;;  %v207_v1 = vmul.f32 %v611_v25, %v191_v45  ;;  %v213_v54 = vsub.f32 2.0, %v205_v22 }
  0x30   :  { %v615_v61 = vpop.eup %614  ;;  %634 = vlog2.f32 %v195_v60  ;;  %v208_v58 = vmul.f32 %v613_v51, %v192_v49  ;;  %v214_v0 = vsub.f32 2.0, %v206_v48  ;;  %v382_v49 = vrot.slane %v381_v28, 1 }
  0x31   :  { %v617_v2 = vpop.eup %616  ;;  %636 = vlog2.f32 %v876_v62  ;;  %v209_v59 = vmul.f32 %v615_v61, %v193_v52  ;;  %v215_v3 = vsub.f32 2.0, %v207_v1  ;;  %v221_v6 = vmul.f32 %v607_v13, %v213_v54 }
  0x32   :  { %v619_v33 = vpop.eup %618  ;;  %v210_v4 = vmul.f32 %v617_v2, %v194_v56  ;;  %v216_v5 = vsub.f32 2.0, %v208_v58  ;;  %v222_v9 = vmul.f32 %v609_v17, %v214_v0  ;;  %v383_v48 = vadd.f32 %v382_v49, %v381_v28 }
  0x33   :  { %v621_v45 = vpop.eup %620  ;;  %v211_v7 = vmul.f32 %v619_v33, %v195_v60  ;;  %v217_v8 = vsub.f32 2.0, %v209_v59  ;;  %v223_v18 = vmul.f32 %v611_v25, %v215_v3  ;;  %v237_v54 = vmul.f32 %v820_v24, %v221_v6 }
  0x34   :  { %v623_v52 = vpop.eup %622  ;;  %v212_v11 = vmul.f32 %v621_v45, %v876_v62  ;;  %v218_v56 = vsub.f32 2.0, %v210_v4  ;;  %v224_v13 = vmul.f32 %v613_v51, %v216_v5  ;;  %v445_v4 = vadd.f32 %v444_v10, %v383_v48 }
  0x35   :  { %v625_v22 = vpop.eup %624  ;;  %v302_v55 = vmul.f32 0.6931472, %v623_v52  ;;  %v219_v1 = vsub.f32 2.0, %v211_v7  ;;  %v225_v0 = vmul.f32 %v615_v61, %v217_v8  ;;  %v238_v3 = vmul.f32 %v823_v26, %v222_v9 }
  0x36   :  { %v627_v60 = vpop.eup %626  ;;  %v304_v17 = vmul.f32 0.6931472, %v625_v22  ;;  %v220_v58 = vsub.f32 2.0, %v212_v11  ;;  %v226_v59 = vmul.f32 %v617_v2, %v218_v56  ;;  %446 = vst [vmem:[#allocation3] sm:$0x1] %v445_v4  ;;  %v239_v2 = vmul.f32 %v829_v29, %v223_v18 }
  0x37   :  { %v629_v62 = vpop.eup %628  ;;  %v306_v25 = vmul.f32 0.6931472, %v627_v60  ;;  %v317_v51 = vadd.f32 %v302_v55, %v892_v12  ;;  %v227_v24 = vmul.f32 %v619_v33, %v219_v1  ;;  %v240_v8 = vmul.f32 %v839_v34, %v224_v13 }
  0x38   :  { %v631_v28 = vpop.eup %630  ;;  %v308_v5 = vmul.f32 0.6931472, %v629_v62  ;;  %v318_v49 = vadd.f32 %v304_v17, %v894_v14  ;;  %v228_v7 = vmul.f32 %v621_v45, %v220_v58  ;;  %v241_v22 = vmul.f32 %v848_v46, %v225_v0 }
  0x39   :  { %v633_v52 = vpop.eup %632  ;;  %v310_v11 = vmul.f32 0.6931472, %v631_v28  ;;  %v319_v61 = vadd.f32 %v306_v25, %v896_v15  ;;  %v242_v45 = vmul.f32 %v854_v50, %v226_v59  ;;  %v243_v29 = vmul.f32 %v861_v53, %v227_v24 }
  0x3a   :  { %v635_v10 = vpop.eup %634  ;;  %v312_v56 = vmul.f32 0.6931472, %v633_v52  ;;  %v320_v12 = vadd.f32 %v308_v5, %v898_v16  ;;  %v399_v26 = vadd.f32 %v318_v49, %v317_v51  ;;  %v245_v34 = vsel %vm229_vm0, %v221_v6, %v237_v54 }
  0x3b   :  { %v637_v48 = vpop.eup %636  ;;  %v314_v14 = vmul.f32 0.6931472, %v635_v10  ;;  %v321_v33 = vadd.f32 %v310_v11, %v900_v19  ;;  %v244_v16 = vmul.f32 %v867_v57, %v228_v7  ;;  %v246_v46 = vsel %vm230_vm1, %v222_v9, %v238_v3 }
  0x3c   :  { %v316_v15 = vmul.f32 0.6931472, %v637_v48  ;;  %v400_v55 = vadd.f32 %v399_v26, %v319_v61  ;;  %v247_v1 = vsel %vm231_vm2, %v223_v18, %v239_v2  ;;  %v248_v19 = vsel %vm232_vm3, %v224_v13, %v240_v8 }
  0x3d   :  { %v322_v50 = vadd.f32 %v312_v56, %v902_v32  ;;  %v323_v60 = vadd.f32 %v314_v14, %v904_v47  ;;  %v249_v35 = vsel %vm233_vm4, %v225_v0, %v241_v22  ;;  %v250_v36 = vsel %vm234_vm5, %v226_v59, %v242_v45  ;;  %v476_v37 = vld [vmem:[#allocation3] sm:$0x1] }
  0x3e   :  { %v401_v17 = vadd.f32 %v400_v55, %v320_v12  ;;  %v324_v53 = vadd.f32 %v316_v15, %v906_v63  ;;  %v333_v57 = vmul.f32 1.442695, %v245_v34  ;;  %v335_v6 = vmul.f32 1.442695, %v246_v46 }
  0x3f   :  { %v337_v18 = vmul.f32 1.442695, %v247_v1  ;;  %v339_v38 = vmul.f32 1.442695, %v248_v19  ;;  %v357_v13 = vadd.f32 %v246_v46, %v245_v34  ;;  %v477_v32 = vsel %vm463_vm6, %v476_v37, 0.0 }
  0x40   :  { %v402_v9 = vadd.f32 %v401_v17, %v321_v33  ;;  %v251_v47 = vsel %vm235_vm7, %v227_v24, %v243_v29  ;;  %638 = vpow2.f32 %v333_v57  ;;  %v341_v39 = vmul.f32 1.442695, %v249_v35  ;;  %478 = vadd.xlane.f32.xlu0 %v477_v32 }
  0x41   :  { %v252_v40 = vsel %vm236_vm8, %v228_v7, %v244_v16  ;;  %640 = vpow2.f32 %v335_v6  ;;  %v343_v63 = vmul.f32 1.442695, %v250_v36  ;;  %v358_v58 = vadd.f32 %v357_v13, %v247_v1 }
  0x42   :  { %v403_v54 = vadd.f32 %v402_v9, %v322_v50  ;;  %642 = vpow2.f32 %v337_v18  ;;  %v325_v0 = vmul.f32 %v810_v20, %v245_v34  ;;  %v326_v59 = vmul.f32 %v813_v21, %v246_v46 }
  0x43   :  { %644 = vpow2.f32 %v339_v38  ;;  %v345_v41 = vmul.f32 1.442695, %v251_v47  ;;  %v359_v4 = vadd.f32 %v358_v58, %v248_v19  ;;  %v327_v25 = vmul.f32 %v818_v23, %v247_v1 }
  0x44   :  { %v404_v62 = vadd.f32 %v403_v54, %v323_v60  ;;  %646 = vpow2.f32 %v341_v39  ;;  %v347_v3 = vmul.f32 1.442695, %v252_v40  ;;  %v328_v28 = vmul.f32 %v826_v27, %v248_v19 }
  0x45   :  { %648 = vpow2.f32 %v343_v63  ;;  %v360_v42 = vadd.f32 %v359_v4, %v249_v35  ;;  %v385_v5 = vadd.f32 %v326_v59, %v325_v0  ;;  %v329_v20 = vmul.f32 %v832_v30, %v249_v35  ;;  %v441_v0 = vld [vmem:[#allocation2] sm:$0x1] }
  0x46   :  { %v405_v51 = vadd.f32 %v404_v62, %v324_v53  ;;  %650 = vpow2.f32 %v345_v41  ;;  %v330_v61 = vmul.f32 %v835_v31, %v250_v36  ;;  %v331_v10 = vmul.f32 %v842_v43, %v251_v47  ;;  %v450_v43 = vld [vmem:[#allocation5] sm:$0x1] }
  0x47   :  { %v361_v24 = vadd.f32 %v360_v42, %v250_v36  ;;  %v386_v21 = vadd.f32 %v385_v5, %v327_v25  ;;  %652 = vpow2.f32 %v347_v3  ;;  %v332_v55 = vmul.f32 %v845_v44, %v252_v40 }
  0x48   :  { %v406_v49 = vrot.slane %v405_v51, 4 }
  0x49   :  { %v362_v11 = vadd.f32 %v361_v24, %v251_v47  ;;  %v387_v23 = vadd.f32 %v386_v21, %v328_v28 }
  0x4a   :  { %v407_v7 = vadd.f32 %v406_v49, %v405_v51  ;;  %v639_v52 = vpop.eup %638 }
  0x4b   :  { %v641_v2 = vpop.eup %640  ;;  %v349_v56 = vmul.f32 %v639_v52, %v639_v52  ;;  %v363_v12 = vadd.f32 %v362_v11, %v252_v40  ;;  %v388_v26 = vadd.f32 %v387_v23, %v329_v20 }
  0x4c   :  { %v408_v8 = vrot.slane %v407_v7, 2  ;;  %v643_v27 = vpop.eup %642  ;;  %v413_v22 = vadd.f32 %v641_v2, %v639_v52  ;;  %v350_v48 = vmul.f32 %v641_v2, %v641_v2 }
  0x4d   :  { %v645_v14 = vpop.eup %644  ;;  %v351_v33 = vmul.f32 %v643_v27, %v643_v27  ;;  %v364_v15 = vrot.slane %v363_v12, 4  ;;  %v389_v29 = vadd.f32 %v388_v26, %v330_v61 }
  0x4e   :  { %v409_v30 = vadd.f32 %v408_v8, %v407_v7  ;;  %v647_v45 = vpop.eup %646  ;;  %v414_v31 = vadd.f32 %v643_v27, %v413_v22  ;;  %v352_v16 = vmul.f32 %v645_v14, %v645_v14  ;;  %v427_v46 = vadd.f32 %v350_v48, %v349_v56  ;;  %v447_v7 = vld [vmem:[#allocation4] sm:$0x1] }
  0x4f   :  { %v649_v1 = vpop.eup %648  ;;  %v365_v19 = vadd.f32 %v364_v15, %v363_v12  ;;  %v390_v50 = vadd.f32 %v389_v29, %v331_v10  ;;  %v353_v35 = vmul.f32 %v647_v45, %v647_v45  ;;  %v453_v12 = vld [vmem:[#allocation6] sm:$0x1] }
  0x50   :  { %v410_v34 = vrot.slane %v409_v30, 1  ;;  %v415_v60 = vadd.f32 %v645_v14, %v414_v31  ;;  %v428_v53 = vadd.f32 %v427_v46, %v351_v33  ;;  %v651_v36 = vpop.eup %650  ;;  %v354_v18 = vmul.f32 %v649_v1, %v649_v1  ;;  %v456_v33 = vld [vmem:[#allocation7] sm:$0x1] }
  0x51   :  { %v366_v57 = vrot.slane %v365_v19, 2  ;;  %v391_v6 = vadd.f32 %v390_v50, %v332_v55  ;;  %v653_v38 = vpop.eup %652  ;;  %v355_v39 = vmul.f32 %v651_v36, %v651_v36 }
  0x52   :  { %v411_v17 = vadd.f32 %v410_v34, %v409_v30  ;;  %v416_v37 = vadd.f32 %v647_v45, %v415_v60  ;;  %v429_v44 = vadd.f32 %v428_v53, %v352_v16  ;;  %v356_v59 = vmul.f32 %v653_v38, %v653_v38 }
  0x53   :  { %v367_v13 = vadd.f32 %v366_v57, %v365_v19  ;;  %v392_v32 = vrot.slane %v391_v6, 4 }
  0x54   :  { %v451_v9 = vadd.f32 %v450_v43, %v411_v17  ;;  %v417_v47 = vadd.f32 %v649_v1, %v416_v37  ;;  %v430_v54 = vadd.f32 %v429_v44, %v353_v35 }
  0x55   :  { %v368_v40 = vrot.slane %v367_v13, 1  ;;  %v393_v63 = vadd.f32 %v392_v32, %v391_v6 }
  0x56   :  { %452 = vst [vmem:[#allocation5] sm:$0x1] %v451_v9  ;;  %v418_v58 = vadd.f32 %v651_v36, %v417_v47  ;;  %v431_v62 = vadd.f32 %v430_v54, %v354_v18 }
  0x57   :  { %v369_v41 = vadd.f32 %v368_v40, %v367_v13  ;;  %v394_v4 = vrot.slane %v393_v63, 2 }
  0x58   :  { %v419_v25 = vadd.f32 %v653_v38, %v418_v58  ;;  %v432_v51 = vadd.f32 %v431_v62, %v355_v39 }
  0x59   :  { %v442_v3 = vadd.f32 %v441_v0, %v369_v41  ;;  %v395_v42 = vadd.f32 %v394_v4, %v393_v63 }
  0x5a   :  { %v420_v28 = vrot.slane %v419_v25, 4  ;;  %v433_v5 = vadd.f32 %v432_v51, %v356_v59 }
  0x5b   :  { %443 = vst [vmem:[#allocation2] sm:$0x1] %v442_v3  ;;  %v396_v24 = vrot.slane %v395_v42, 1 }
  0x5c   :  { %v421_v20 = vadd.f32 %v420_v28, %v419_v25  ;;  %v434_v52 = vrot.slane %v433_v5, 4 }
  0x5d   :  { %v502_v49 = vld [vmem:[#allocation5] sm:$0x1]  ;;  %v397_v11 = vadd.f32 %v396_v24, %v395_v42 }
  0x5e   :  { %v503_v21 = vsel %vm463_vm6, %v502_v49, 0.0  ;;  %v422_v61 = vrot.slane %v421_v20, 2  ;;  %v435_v23 = vadd.f32 %v434_v52, %v433_v5 }
  0x5f   :  { %504 = vadd.xlane.f32.xlu1 %v503_v21  ;;  %v448_v2 = vadd.f32 %v447_v7, %v397_v11 }
  0x60   :  { %v423_v8 = vadd.f32 %v422_v61, %v421_v20  ;;  %v436_v10 = vrot.slane %v435_v23, 2 }
  0x61   :  { %449 = vst [vmem:[#allocation4] sm:$0x1] %v448_v2 }
  0x62   :  { %v424_v56 = vrot.slane %v423_v8, 1  ;;  %v462_v27 = vld [vmem:[#allocation2] sm:$0x1]  ;;  %v437_v26 = vadd.f32 %v436_v10, %v435_v23 }
  0x63   :  { %v464_v22 = vsel %vm463_vm6, %v462_v27, 0.0 }
  0x64   :  { %v425_v48 = vadd.f32 %v424_v56, %v423_v8  ;;  %465 = vadd.xlane.f32.xlu0 %v464_v22  ;;  %v438_v14 = vrot.slane %v437_v26, 1 }
  0x66   :  { %v454_v30 = vadd.f32 %v453_v12, %v425_v48  ;;  %v439_v45 = vadd.f32 %v438_v14, %v437_v26 }
  0x68   :  { %455 = vst [vmem:[#allocation6] sm:$0x1] %v454_v30  ;;  %v489_v15 = vld [vmem:[#allocation4] sm:$0x1]  ;;  %v457_v55 = vadd.f32 %v456_v33, %v439_v45 }
  0x69   :  { %v490_v29 = vsel %vm463_vm6, %v489_v15, 0.0 }
  0x6a   :  { %491 = vadd.xlane.f32.xlu1 %v490_v29  ;;  %458 = vst [vmem:[#allocation7] sm:$0x1] %v457_v55 }
  0x6f   :  { %v515_v31 = vld [vmem:[#allocation6] sm:$0x1] }
  0x70   :  { %v516_v34 = vsel %vm463_vm6, %v515_v31, 0.0 }
  0x71   :  { %517 = vadd.xlane.f32.xlu0 %v516_v34  ;;  %v528_v16 = vld [vmem:[#allocation7] sm:$0x1] }
  0x72   :  { %v529_v46 = vsel %vm463_vm6, %v528_v16, 0.0 }
  0x73   :  { %530 = vadd.xlane.f32.xlu1 %v529_v46 }
  0xcd   :  { %v479_v1 = vpop.xlane.xlu0 %478 }
  0xce   :  { %v480_v43 = vrot.slane %v479_v1, 4 }
  0xd0   :  { %v481_v19 = vadd.f32 %v480_v43, %v479_v1 }
  0xd2   :  { %v482_v17 = vrot.slane %v481_v19, 2 }
  0xd4   :  { %v483_v57 = vadd.f32 %v482_v17, %v481_v19 }
  0xd6   :  { %v484_v44 = vrot.slane %v483_v57, 1 }
  0xd8   :  { %v485_v54 = vadd.f32 %v484_v44, %v483_v57 }
  0xec   :  { %v505_v50 = vpop.xlane.xlu1 %504 }
  0xed   :  { %v506_v60 = vrot.slane %v505_v50, 4 }
  0xef   :  { %v507_v35 = vadd.f32 %v506_v60, %v505_v50 }
  0xf1   :  { %v466_v53 = vpop.xlane.xlu0 %465  ;;  %v508_v37 = vrot.slane %v507_v35, 2 }
  0xf2   :  { %v467_v36 = vrot.slane %v466_v53, 4 }
  0xf3   :  { %v509_v32 = vadd.f32 %v508_v37, %v507_v35 }
  0xf4   :  { %v468_v6 = vadd.f32 %v467_v36, %v466_v53 }
  0xf5   :  { %v510_v0 = vrot.slane %v509_v32, 1 }
  0xf6   :  { %v469_v9 = vrot.slane %v468_v6, 2 }
  0xf7   :  { %v492_v18 = vpop.xlane.xlu1 %491  ;;  %v511_v3 = vadd.f32 %v510_v0, %v509_v32 }
  0xf8   :  { %v493_v38 = vrot.slane %v492_v18, 4  ;;  %v470_v13 = vadd.f32 %v469_v9, %v468_v6 }
  0xfa   :  { %v494_v47 = vadd.f32 %v493_v38, %v492_v18  ;;  %v471_v39 = vrot.slane %v470_v13, 1 }
  0xfc   :  { %v495_v40 = vrot.slane %v494_v47, 2  ;;  %v472_v63 = vadd.f32 %v471_v39, %v470_v13 }
  0xfe   :  { %v518_v58 = vpop.xlane.xlu0 %517  ;;  %576 = vpush %v472_v63  ;;  %v496_v62 = vadd.f32 %v495_v40, %v494_v47 }
  0xff   :  { %v519_v59 = vrot.slane %v518_v58, 4  ;;  %578 = vpush %v485_v54 }
 0x100   :  { %v531_v4 = vpop.xlane.xlu1 %530  ;;  %v497_v25 = vrot.slane %v496_v62, 1 }
 0x101   :  { %v520_v41 = vadd.f32 %v519_v59, %v518_v58  ;;  %v532_v51 = vrot.slane %v531_v4, 4 }
 0x102   :  { %v498_v28 = vadd.f32 %v497_v25, %v496_v62 }
 0x103   :  { %v521_v42 = vrot.slane %v520_v41, 2  ;;  %v533_v5 = vadd.f32 %v532_v51, %v531_v4 }
 0x104   :  { %580 = vpush %v498_v28 }
 0x105   :  { %v522_v49 = vadd.f32 %v521_v42, %v520_v41  ;;  %v534_v24 = vrot.slane %v533_v5, 2  ;;  %582 = vpush %v511_v3 }
 0x107   :  { %v523_v20 = vrot.slane %v522_v49, 1  ;;  %v535_v21 = vadd.f32 %v534_v24, %v533_v5 }
 0x109   :  { %v524_v7 = vadd.f32 %v523_v20, %v522_v49  ;;  %v536_v52 = vrot.slane %v535_v21, 1 }
 0x10b   :  { %584 = vpush %v524_v7  ;;  %v537_v11 = vadd.f32 %v536_v52, %v535_v21 }
 0x10d   :  { %586 = vpush %v537_v11 }
 0x12f   :  { %s577_s1 = spop %576 }
 0x130   :  { %475 = sst [smem:[#allocation8]] %s577_s1  ;;  %s579_s12 = spop %578 }
 0x131   :  { %488 = sst [smem:[#allocation8 + $0x1]] %s579_s12 }
 0x135   :  { %s581_s13 = spop %580 }
 0x136   :  { %501 = sst [smem:[#allocation8 + $0x2]] %s581_s13  ;;  %s583_s14 = spop %582 }
 0x137   :  { %514 = sst [smem:[#allocation8 + $0x3]] %s583_s14 }
 0x13c   :  { %s585_s18 = spop %584 }
 0x13d   :  { %527 = sst [smem:[#allocation8 + $0x4]] %s585_s18 }
 0x13e   :  { %s587_s19 = spop %586 }
 0x13f   :  { %540 = sst [smem:[#allocation8 + $0x5]] %s587_s19 }
 0x140   :  { %665 = shalt.err (!%p662_p4)
}
 0x141   :  { %s669_s21 = smov [#allocation8]  }
 0x142   :  { %550 = dma.smem_to_vmem %s669_s21, 16, %s548_s17, [#allocation9]  }
 0x143   :  { %666 = dma.done.wait [#allocation9], 16  }
 0x144   :  { %667 = vsyncadd [#allocation9], 4294967280 }
 0x145   :  { %554 = sfence }
 0x146   :  { %555 = vsyncpa [#allocation9], 1 }

</bundles_post_ra>
